<compile_context>
chip_gen: v7x
topology: tpu7x:2x2x1
jax: 0.10.0
libtpu: 0.0.40
codegen_flags: <defaults>
</compile_context>

<pallas_src>
import math
from functools import partial

import jax
import jax.numpy as jnp
from jax.experimental import pallas as pl
from jax.experimental.pallas import tpu as pltpu


_VMEM_LIMIT = 32 * 1024 * 1024  # safe on v5e (16 MiB default) and v7x (64 MiB physical)


def _tile(dim, target, align):
    """Largest multiple of `align` that divides `dim` and is <= target, else dim (full)."""
    if dim <= target:
        return dim
    t = (target // align) * align
    while t >= align:
        if dim % t == 0:
            return t
        t -= align
    return dim


def _softmax_exp_dtype():
    """bf16 exp on v6e/v7x (EUP bf16 ~2x rate); f32 on v5e/older (no bf16 EUP)."""
    try:
        kind = jax.devices()[0].device_kind.lower()
    except Exception:
        return jnp.float32
    if any(t in kind for t in ("v2", "v3", "v4", "v5")):
        return jnp.float32
    return jnp.bfloat16


# ---------------------------------------------------------------------------
# Fused per-head QKV projection:  qkv[p, b*H+h] = x[b or p,b] @ W[p,h] + bias[p,h]
# ---------------------------------------------------------------------------
def _qkv_proj_kernel(x_ref, w_ref, b_ref, o_ref):
    # x [tm, d_model] bf16, w [d_model, d_k] bf16, b [1, d_k] f32 -> o [tm, d_k] bf16
    acc = jnp.dot(x_ref[...], w_ref[...], preferred_element_type=jnp.float32)
    o_ref[...] = (acc + b_ref[...]).astype(o_ref.dtype)


def qkv_projection(x_all, w_qkv, b_qkv, b, s, h, d_k, *, out_dtype=jnp.bfloat16):
    """x_all: [n_x, B, S, d_model] bf16 (n_x=1 self-attn / 3 cross-attn),
    w_qkv: [3, H, d_model, d_k] bf16, b_qkv: [3, H, 1, d_k] f32
    -> [3, B*H, S, d_k] (per-head, lane-dense; no HBM transpose)."""
    n_x, _, _, d_model = x_all.shape
    tm = _tile(s, 512, 8)
    grid = (3, b, s // tm, h)  # head axis innermost -> x block reused across heads

    if n_x == 3:
        x_map = lambda p, bi, i, hi: (p, bi, i, 0)
    else:
        x_map = lambda p, bi, i, hi: (0, bi, i, 0)

    return pl.pallas_call(
        _qkv_proj_kernel,
        out_shape=jax.ShapeDtypeStruct((3, b * h, s, d_k), out_dtype),
        grid=grid,
        in_specs=[
            pl.BlockSpec((None, None, tm, d_model), x_map),
            pl.BlockSpec((None, None, d_model, d_k), lambda p, bi, i, hi: (p, hi, 0, 0)),
            pl.BlockSpec((None, None, 1, d_k), lambda p, bi, i, hi: (p, hi, 0, 0)),
        ],
        out_specs=pl.BlockSpec(
            (None, None, tm, d_k), lambda p, bi, i, hi: (p, bi * h + hi, i, 0)
        ),
        compiler_params=pltpu.CompilerParams(
            dimension_semantics=("parallel", "parallel", "parallel", "parallel"),
            vmem_limit_bytes=_VMEM_LIMIT,
        ),
    )(x_all, w_qkv, b_qkv)


# ---------------------------------------------------------------------------
# Flash-style scaled dot-product attention (online softmax, per (batch, head))
# ---------------------------------------------------------------------------
def _flash_attn_kernel(q_ref, k_ref, v_ref, o_ref, m_sc, l_sc, acc_sc, *,
                       scale, exp_dtype):
    kv = pl.program_id(2)

    @pl.when(kv == 0)
    def _():
        m_sc[...] = jnp.full(m_sc.shape, -jnp.inf, m_sc.dtype)
        l_sc[...] = jnp.zeros(l_sc.shape, l_sc.dtype)
        acc_sc[...] = jnp.zeros(acc_sc.shape, acc_sc.dtype)

    # Scale q (tq*d_k muls) instead of the tq*tkv score matrix.
    q = q_ref[...] * scale                                       # [tq, d_k] bf16
    # q @ k^T via dot_general contracting the last dims: no in-kernel K transpose.
    scores = jax.lax.dot_general(
        q, k_ref[...],
        dimension_numbers=(((1,), (1,)), ((), ())),
        preferred_element_type=jnp.float32,
    )                                                            # [tq, tkv] f32

    m_prev = m_sc[...]
    m_new = jnp.maximum(m_prev, jnp.max(scores, axis=-1, keepdims=True))
    alpha = jnp.exp(m_prev - m_new)
    # exp in bf16 on v6e/v7x (EUP slot is the saturating unit once the MXU runs
    # bf16); kept f32 on v5e.  m / l / acc accumulation stays f32.
    p = jnp.exp((scores - m_new).astype(exp_dtype))
    l_sc[...] = alpha * l_sc[...] + jnp.sum(p, axis=-1, keepdims=True,
                                            dtype=jnp.float32)
    acc_sc[...] = alpha * acc_sc[...] + jnp.dot(
        p.astype(v_ref.dtype), v_ref[...], preferred_element_type=jnp.float32)
    m_sc[...] = m_new

    @pl.when(kv == pl.num_programs(2) - 1)
    def _():
        # Deferred normalization with an exact reciprocal (one [tq,1] vector per
        # q tile -> effectively free, restores tight numerical parity).
        inv_l = pl.reciprocal(l_sc[...], approx=False)
        o_ref[...] = (acc_sc[...] * inv_l).astype(o_ref.dtype)


def flash_attention(qkv, b, s, h, d_k, *, exp_dtype, out_dtype=jnp.bfloat16):
    """qkv: [3, B*H, S, d_k] -> context [B*H, S, d_k] (lane-dense 2-D blocks)."""
    bh = b * h
    tq = _tile(s, 256, 8)    # >=256 rows keeps the 256-wide MXU fed on v6e/v7x
    tkv = _tile(s, 256, 8)
    scale = 1.0 / math.sqrt(d_k)
    grid = (bh, s // tq, s // tkv)
    return pl.pallas_call(
        partial(_flash_attn_kernel, scale=scale, exp_dtype=exp_dtype),
        out_shape=jax.ShapeDtypeStruct((bh, s, d_k), out_dtype),
        grid=grid,
        in_specs=[
            pl.BlockSpec((None, None, tq, d_k), lambda i, qi, ki: (0, i, qi, 0)),
            pl.BlockSpec((None, None, tkv, d_k), lambda i, qi, ki: (1, i, ki, 0)),
            pl.BlockSpec((None, None, tkv, d_k), lambda i, qi, ki: (2, i, ki, 0)),
        ],
        out_specs=pl.BlockSpec((None, tq, d_k), lambda i, qi, ki: (i, qi, 0)),
        scratch_shapes=[
            pltpu.VMEM((tq, 1), jnp.float32),    # running max m
            pltpu.VMEM((tq, 1), jnp.float32),    # running sum l
            pltpu.VMEM((tq, d_k), jnp.float32),  # accumulator
        ],
        compiler_params=pltpu.CompilerParams(
            dimension_semantics=("parallel", "parallel", "arbitrary"),
            vmem_limit_bytes=_VMEM_LIMIT,
        ),
    )(qkv, qkv, qkv)


# ---------------------------------------------------------------------------
# Output projection: out[b] = sum_h ctx[b*H+h] @ Wo[h] + bo  (head reduction)
# ---------------------------------------------------------------------------
def _out_proj_kernel(ctx_ref, w_ref, b_ref, o_ref, acc_ref):
    hi = pl.program_id(3)

    @pl.when(hi == 0)
    def _():
        acc_ref[...] = jnp.zeros_like(acc_ref)

    acc_ref[...] += jnp.dot(ctx_ref[...], w_ref[...],
                            preferred_element_type=jnp.float32)

    @pl.when(hi == pl.num_programs(3) - 1)
    def _():
        o_ref[...] = (acc_ref[...] + b_ref[...]).astype(o_ref.dtype)


def output_projection(ctx, w_o, b_o, b, s, h, d_k, *, out_dtype=jnp.float32):
    """ctx: [B*H, S, d_k] bf16, w_o: [H, d_k, d_model] bf16, b_o: [1, d_model] f32."""
    d_model = h * d_k
    tm = _tile(s, 512, 8)
    tn = _tile(d_model, 512, 128)
    grid = (b, s // tm, d_model // tn, h)  # head reduction innermost
    return pl.pallas_call(
        _out_proj_kernel,
        out_shape=jax.ShapeDtypeStruct((b, s, d_model), out_dtype),
        grid=grid,
        in_specs=[
            pl.BlockSpec((None, tm, d_k), lambda bi, i, j, hi: (bi * h + hi, i, 0)),
            pl.BlockSpec((None, d_k, tn), lambda bi, i, j, hi: (hi, 0, j)),
            pl.BlockSpec((1, tn), lambda bi, i, j, hi: (0, j)),
        ],
        out_specs=pl.BlockSpec((None, tm, tn), lambda bi, i, j, hi: (bi, i, j)),
        scratch_shapes=[pltpu.VMEM((tm, tn), jnp.float32)],
        compiler_params=pltpu.CompilerParams(
            dimension_semantics=("parallel", "parallel", "parallel", "arbitrary"),
            vmem_limit_bytes=_VMEM_LIMIT,
        ),
    )(ctx, w_o, b_o)


# ---------------------------------------------------------------------------
# MultiHeadedAttention forward (eval mode)
# ---------------------------------------------------------------------------
def init_params(key, h, d_model):
    """nn.Linear-shaped params; weights stored [d_in, d_out] so kernels do x @ W + b."""
    keys = jax.random.split(key, 8)
    bound = 1.0 / math.sqrt(d_model)
    params = {}
    for i, name in enumerate(["wq", "wk", "wv", "wo"]):
        params[name] = jax.random.uniform(
            keys[2 * i], (d_model, d_model), jnp.float32, -bound, bound)
        params["b" + name[1]] = jax.random.uniform(
            keys[2 * i + 1], (d_model,), jnp.float32, -bound, bound)
    return params


def _prepare_params(params, h, d_model, d_k):
    # Per-head weight layout [3, H, d_model, d_k]: a parameter-sized, one-time
    # transpose (in a real model this layout is produced once at load time).
    def per_head(w):
        return jnp.transpose(w.reshape(d_model, h, d_k), (1, 0, 2))

    w_qkv = jnp.stack([per_head(params["wq"]), per_head(params["wk"]),
                       per_head(params["wv"])]).astype(jnp.bfloat16)
    b_qkv = jnp.stack([params["bq"], params["bk"], params["bv"]]
                      ).reshape(3, h, 1, d_k).astype(jnp.float32)
    w_o = params["wo"].reshape(h, d_k, d_model).astype(jnp.bfloat16)   # free reshape
    b_o = params["bo"].reshape(1, d_model).astype(jnp.float32)
    return w_qkv, b_qkv, w_o, b_o


def multi_headed_attention(params, query, key, value, h, mask=None):
    """query/key/value: [B, S, d_model] f32 -> [B, S, d_model] f32 (eval mode)."""
    if mask is not None:
        # TODO(synk): attention mask (masked_fill) not implemented.
        raise NotImplementedError("mask is not supported")

    b, s, d_model = query.shape
    d_k = d_model // h
    w_qkv, b_qkv, w_o, b_o = _prepare_params(params, h, d_model, d_k)

    # Self-attention: share a single bf16 activation (no jnp.stack HBM copy);
    # cross-attention keeps the stacked path.
    if query is key and key is value:
        x_all = query.astype(jnp.bfloat16)[None]                       # [1,B,S,D]
    else:
        x_all = jnp.stack([a.astype(jnp.bfloat16)
                           for a in (query, key, value)])              # [3,B,S,D]

    qkv = qkv_projection(x_all, w_qkv, b_qkv, b, s, h, d_k)            # [3,B*H,S,d_k] bf16
    ctx = flash_attention(qkv, b, s, h, d_k,
                          exp_dtype=_softmax_exp_dtype())              # [B*H,S,d_k] bf16
    out = output_projection(ctx, w_o, b_o, b, s, h, d_k)               # [B,S,d_model] f32
    return out


# ---------------------------------------------------------------------------
if __name__ == "__main__":
    B, S, D_MODEL, H = 2, 8, 32, 4

    root = jax.random.PRNGKey(0)
    k_params, k_q, k_k, k_v = jax.random.split(root, 4)

    params = init_params(k_params, H, D_MODEL)
    x = jax.random.normal(k_q, (B, S, D_MODEL), jnp.float32)
    kx = jax.random.normal(k_k, (B, S, D_MODEL), jnp.float32)
    vx = jax.random.normal(k_v, (B, S, D_MODEL), jnp.float32)

    # self-attention path (shared activation, no stack copy)
    out_self = multi_headed_attention(params, x, x, x, H)
    jax.block_until_ready(out_self)
    # cross-attention path (distinct activations)
    out_cross = multi_headed_attention(params, x, kx, vx, H)
    jax.block_until_ready(out_cross)

    # Pure-JAX f32 reference (mirrors the PyTorch module).
    def ref_forward(params, q, k, v):
        d_k = D_MODEL // H

        def proj(xx, w, bias):
            return (xx @ w + bias).reshape(B, S, H, d_k).transpose(0, 2, 1, 3)

        qh = proj(q, params["wq"], params["bq"])
        kh = proj(k, params["wk"], params["bk"])
        vh = proj(v, params["wv"], params["bv"])
        scores = jnp.einsum("bhqd,bhkd->bhqk", qh, kh) / math.sqrt(d_k)
        p = jax.nn.softmax(scores, axis=-1)
        xh = jnp.einsum("bhqk,bhkd->bhqd", p, vh)
        xc = xh.transpose(0, 2, 1, 3).reshape(B, S, D_MODEL)
        return xc @ params["wo"] + params["bo"]

    for out, (q, k, v) in ((out_self, (x, x, x)), (out_cross, (x, kx, vx))):
        ref = ref_forward(params, q, k, v)
        err = float(jnp.max(jnp.abs(out - ref)))
        # tolerance dominated by bf16 MXU operands and bf16 qkv/ctx intermediates
        assert err < 5e-2, f"mismatch vs reference: max abs err {err}"

    print("KERNEL_OK")
</pallas_src>

<mosaic_0001>
module attributes {stable_mosaic.version = 11 : i64} {
  func.func @_qkv_proj_kernel(%arg0: i32, %arg1: i32, %arg2: i32, %arg3: i32, %arg4: memref<1x1x8x32xbf16, #tpu.memory_space<vmem>>, %arg5: memref<1x1x32x8xbf16, #tpu.memory_space<vmem>>, %arg6: memref<1x1x1x8xf32, #tpu.memory_space<vmem>>, %arg7: memref<1x1x8x8xbf16, #tpu.memory_space<vmem>>) attributes {dimension_semantics = [#tpu.dimension_semantics<parallel>, #tpu.dimension_semantics<parallel>, #tpu.dimension_semantics<parallel>, #tpu.dimension_semantics<parallel>], iteration_bounds = array<i64: 3, 2, 1, 4>, scalar_prefetch = 0 : i64, scratch_operands = 0 : i64, tpu.core_type = #tpu.core_type<tc>, window_params = [{transform_indices = @transform_0, window_bounds = array<i64: 1, 1, 8, 32>}, {transform_indices = @transform_1, window_bounds = array<i64: 1, 1, 32, 8>}, {transform_indices = @transform_2, window_bounds = array<i64: 1, 1, 1, 8>}, {transform_indices = @transform_3, window_bounds = array<i64: 1, 1, 8, 8>}]} {
    %c0 = arith.constant 0 : index
    %c0_0 = arith.constant 0 : index
    %c0_1 = arith.constant 0 : index
    %c0_2 = arith.constant 0 : index
    %0 = vector.load %arg4[%c0, %c0_0, %c0_1, %c0_2] : memref<1x1x8x32xbf16, #tpu.memory_space<vmem>>, vector<1x1x8x32xbf16>
    %1 = vector.shape_cast %0 : vector<1x1x8x32xbf16> to vector<8x32xbf16>
    %c0_3 = arith.constant 0 : index
    %c0_4 = arith.constant 0 : index
    %c0_5 = arith.constant 0 : index
    %c0_6 = arith.constant 0 : index
    %2 = vector.load %arg5[%c0_3, %c0_4, %c0_5, %c0_6] : memref<1x1x32x8xbf16, #tpu.memory_space<vmem>>, vector<1x1x32x8xbf16>
    %3 = vector.shape_cast %2 : vector<1x1x32x8xbf16> to vector<32x8xbf16>
    %cst = arith.constant dense<0.000000e+00> : vector<8x8xf32>
    %4 = tpu.matmul %1, %3, %cst {dimension_numbers = #tpu.dot_dimension_numbers<[1], [0], [0], [1], [0, 0, 1, 1], [], []>} : vector<8x32xbf16>, vector<32x8xbf16>, vector<8x8xf32> -> vector<8x8xf32>
    %c0_7 = arith.constant 0 : index
    %c0_8 = arith.constant 0 : index
    %c0_9 = arith.constant 0 : index
    %c0_10 = arith.constant 0 : index
    %5 = vector.load %arg6[%c0_7, %c0_8, %c0_9, %c0_10] : memref<1x1x1x8xf32, #tpu.memory_space<vmem>>, vector<1x1x1x8xf32>
    %6 = vector.shape_cast %5 : vector<1x1x1x8xf32> to vector<1x8xf32>
    %7 = vector.broadcast %6 : vector<1x8xf32> to vector<8x8xf32>
    %8 = arith.addf %4, %7 : vector<8x8xf32>
    %9 = arith.truncf %8 : vector<8x8xf32> to vector<8x8xbf16>
    %c0_11 = arith.constant 0 : index
    %c0_12 = arith.constant 0 : index
    %c0_13 = arith.constant 0 : index
    %c0_14 = arith.constant 0 : index
    %10 = vector.load %arg7[%c0_11, %c0_12, %c0_13, %c0_14] : memref<1x1x8x8xbf16, #tpu.memory_space<vmem>>, vector<1x1x8x8xbf16>
    %11 = vector.shape_cast %10 : vector<1x1x8x8xbf16> to vector<8x8xbf16>
    %12 = vector.shape_cast %9 : vector<8x8xbf16> to vector<1x1x8x8xbf16>
    tpu.vector_store %arg7[%c0_11, %c0_12, %c0_13, %c0_14], %12 {strides = array<i32>} : memref<1x1x8x8xbf16, #tpu.memory_space<vmem>>, vector<1x1x8x8xbf16>,
    return
  }
  func.func @transform_0(%arg0: i32, %arg1: i32, %arg2: i32, %arg3: i32) -> (i32, i32, i32, i32) {
    %c0_i32 = arith.constant 0 : i32
    %c0_i32_0 = arith.constant 0 : i32
    %c0_i32_1 = arith.constant 0 : i32
    return %c0_i32, %arg1, %arg2, %c0_i32_0 : i32, i32, i32, i32
  }
  func.func @transform_1(%arg0: i32, %arg1: i32, %arg2: i32, %arg3: i32) -> (i32, i32, i32, i32) {
    %c0_i32 = arith.constant 0 : i32
    %c0_i32_0 = arith.constant 0 : i32
    %c0_i32_1 = arith.constant 0 : i32
    return %arg0, %arg3, %c0_i32, %c0_i32_0 : i32, i32, i32, i32
  }
  func.func @transform_2(%arg0: i32, %arg1: i32, %arg2: i32, %arg3: i32) -> (i32, i32, i32, i32) {
    %c0_i32 = arith.constant 0 : i32
    %c0_i32_0 = arith.constant 0 : i32
    %c0_i32_1 = arith.constant 0 : i32
    return %arg0, %arg3, %c0_i32, %c0_i32_0 : i32, i32, i32, i32
  }
  func.func @transform_3(%arg0: i32, %arg1: i32, %arg2: i32, %arg3: i32) -> (i32, i32, i32, i32) {
    %c4_i32 = arith.constant 4 : i32
    %0 = arith.muli %arg1, %c4_i32 : i32
    %1 = arith.addi %0, %arg3 : i32
    %c0_i32 = arith.constant 0 : i32
    %c0_i32_0 = arith.constant 0 : i32
    return %arg0, %1, %arg2, %c0_i32 : i32, i32, i32, i32
  }
}

</mosaic_0001>

<bundles_post_ra>
// kernel: tpu_custom_call.1
= control target key start
LH: loop header
LB: loop body
LE: loop exit
PB: predicated region body
PF: predicated region fallthrough
CT: control target
= control target key end

     0   :  { %8 = vsyncpa [#allocation3], 0  ;;  %s917_s0 = inlined_call_operand.vmem [shape: bf16[1,2,8,32], index: 0, kind: input, shape index: {}]   ;;  %s918_s1 = inlined_call_operand.vmem [shape: bf16[3,4,32,8], index: 1, kind: input, shape index: {}]   ;;  %s919_s2 = inlined_call_operand.vmem [shape: f32[3,4,1,8], index: 2, kind: input, shape index: {}]   ;;  %s920_s3 = inlined_call_operand.hbm [shape: bf16[3,8,8,8], index: 3, kind: output, shape index: {}]  }
   0x1   :  { %10 = vsyncpa [#allocation3 + $0x1], 0  ;;  %s749_s12 = smov 0   ;;  %s751_s13 = smov 0  }
   0x2   :  { %s753_s14 = smov 0   ;;  %s755_s15 = smov 0  }
   0x3   :  { %s757_s16 = smov 0   ;;  %s759_s17 = smov 0  }
   0x4   :  { %s761_s18 = smov 0   ;;  %s763_s19 = smov 0  }
   0x5   :  { %s765_s20 = smov 0   ;;  %s767_s21 = smov 0  }
   0x6 LB: > { %925 = sst [smem:[#allocation5_spill]] %s720_s20  ;;  %s489_s22 = sadd.s32 4294967295, %s724_s21   ;;  %s724_s21 = sphi %s767_s21, %s16_s21   ;;  %s720_s20 = sphi %s765_s20, %s934_s20   ;;  %s716_s19 = sphi %s763_s19, %s941_s19   ;;  %s712_s18 = sphi %s761_s18, %s940_s18   ;;  %s708_s17 = sphi %s759_s17, %s931_s17   ;;  %s704_s16 = sphi %s757_s16, %s939_s16   ;;  %s700_s15 = sphi %s755_s15, %s938_s15   ;;  %s696_s14 = sphi %s753_s14, %s937_s14   ;;  %s692_s13 = sphi %s751_s13, %s936_s13   ;;  %s688_s12 = sphi %s749_s12, %s935_s12  }
   0x7   : > { %s490_s23 = sadd.s32 4294967294, %s724_s21   ;;  %s31_s24 = sadd.s32 1, %s712_s18 }
   0x8   : > { %p32_p0 = scmp.ge.s32.totalorder %s31_s24, 4  ;;  %s38_s25 = sadd.s32 1, %s716_s19 }
   0x9   : > { %s42_s26 = sadd.s32 1, %s720_s20  ;;  %s491_s27 = sshll.u32 %s716_s19, 2 }
   0xa   : > { %s943_s24 = smov (%p32_p0, %s31_s24), 0  ;;  %s945_s25 = smov (!%p32_p0, %s38_s25), %s716_s19 }
   0xb   : > { %926 = sst [smem:[#allocation6_spill]] %s943_s24  ;;  %s131_s28 = sadd.s32 %s712_s18, %s491_s27 }
   0xc   : > { %p151_p1 = scmp.ne.s32.totalorder %s696_s14, %s692_s13  ;;  %p40_p2 = scmp.ge.s32.totalorder %s945_s25, 2 }
   0xd   : > { %p152_p3 = scmp.eq.s32.totalorder %s489_s22, 23  ;;  %p157_p4 = scmp.ne.s32.totalorder %s692_s13, %s688_s12 }
   0xe   : > { %p158_p5 = scmp.eq.s32.totalorder %s490_s23, 23  ;;  %s947_s25 = smov (%p40_p2, %s945_s25), 0 }
   0xf   : > { %927 = sst [smem:[#allocation7_spill]] %s947_s25  ;;  %s949_s26 = smov (!%p40_p2, %s42_s26), %s720_s20 }
  0x10   : > { %s492_s29 = sshll.u32 %s947_s25, 2  ;;  %p817_p6 = por %p152_p3, %p151_p1 }
  0x11   : > { %p44_p7 = scmp.ge.s32.totalorder %s949_s26, 3  ;;  %s133_s4 = sadd.s32 %s492_s29, %s943_s24 }
  0x12   : > { %s135_s5 = ssub.s32 %s131_s28, %s133_s4  ;;  %p822_p8 = por %p158_p5, %p157_p4 }
  0x13   : > { %s951_s26 = smov (%p44_p7, %s949_s26), 0  ;;  %p495_p9 = scmp.ge.s32.totalorder %s724_s21, 1 }
  0x14   : > { %930 = sst [smem:[#allocation8_spill]] %s951_s26  ;;  %p208_p10 = scmp.lt.s32.totalorder %s724_s21, 25 }
  0x15   : > { %s134_s7 = ssub.s32 %s720_s20, %s951_s26  ;;  %s141_s8 = sadd.s32 1, %s696_s14 }
  0x16   : > { %s136_s9 = sor.u32 %s135_s5, %s134_s7  ;;  %p209_p11 = pnand %p495_p9, %p208_p10 }
  0x17   : > { %p139_p12 = scmp.eq.s32.totalorder %s136_s9, 0  ;;  %p257_p13 = scmp.lt.s32.totalorder (!%p209_p11), %s708_s17, 2  ;;  %v726_v0 = vmov (!%p209_p11), 0.0   ;;  %vm727_vm0 = vmmov (!%p209_p11), 0   ;;  %vm300_vm1 = vcmask (!%p209_p11), 261120   ;;  %vm345_vm2 = vcmask (!%p209_p11), 60416  }
  0x18   : > { %212 = sbr.rel (%p209_p11) target bundleno = 276 (0x114), region = 32  ;;  %p259_p0 = scmp.lt.s32.totalorder (!%p209_p11), %s700_s15, 3  ;;  %515 = vmatprep.subr.bf16.mxu0 (!%p209_p11), %v726_v0  ;;  %519 = vmatprep.mubr.msk.bf16.mxu0 (!%p209_p11), %vm727_vm0, %v726_v0 }
  0x19   : > { %s834_s10 = scalar_select %p139_p12, %s696_s14, %s141_s8  }
  0x1a   : > { %p250_p1 = scmp.lt.s32.totalorder (!%p209_p11), %s704_s16, 1 }
  0x1f   : > { %s258_s11 = scalar_select %p257_p13, %s708_s17, 2 }
  0x20   : > { %s260_s22 = scalar_select %p259_p0, %s700_s15, 3 }
  0x21   : > { %s499_s23 = sshll.u32 %s258_s11, 4  ;;  %s501_s27 = sshll.u32 %s258_s11, 2 }
  0x22   : > { %s498_s28 = sshll.u32 %s260_s22, 2  ;;  %s271_s29 = sadd.s32 %s501_s27, %s260_s22 }
  0x23   : > { %s263_s4 = sadd.s32 %s499_s23, %s498_s28  ;;  %s247_s22 = sand.u32 1, %s692_s13  }
  0x24   : > { %s500_s5 = sshll.u32 %s263_s4, 2  ;;  %s507_s23 = sshll.u32 %s704_s16, 2 }
  0x25   : > { %s265_s9 = scalar_lea.vmem %s918_s1, %s500_s5  ;;  %s496_s27 = sshll.u32 %s247_s22, 2 }
  0x26   : > { %v612_v1 = vld [vmem:[%s265_s9] sm:$0xff]   ;;  %s251_s26 = scalar_select %p250_p1, %s704_s16, 1  ;;  %v613_v2 = vld [vmem:[%s265_s9 + $0x8] sm:$0xff]  }
  0x27   : > { %516 = vmatpush3.bf16.msra.mxu0 %v612_v1  ;;  %s356_s28 = sadd.s32 %s700_s15, %s507_s23  ;;  %s508_s4 = sshll.u32 %s708_s17, 3 }
  0x28   : > { %s497_s25 = sshll.u32 %s251_s26, 2  ;;  %517 = vmatprep.subr.bf16.mxu0 %v726_v0  ;;  %s272_s8 = scalar_lea.vmem %s919_s2, %s271_s29 }
  0x29   : > { %s256_s20 = scalar_lea.vmem %s917_s0, %s497_s25  ;;  %s362_s9 = sadd.s32 %s508_s4, %s356_s28  ;;  %v502_v4 = vld [vmem:[%s272_s8] ss:$0 sm:$0xff] }
  0x2a   : > { %v276_v3 = vld [vmem:[%s256_s20] sm:$0xf]  ;;  %s509_s26 = sshll.u32 %s362_s9, 6  ;;  %s249_s24 = scalar_lea.vmem [#allocation2], %s496_s27 }
  0x2b   : > { %518 = vmatpush3.bf16.msra.mxu0 %v613_v2  ;;  %s366_s25 = sshll.u32 %s249_s24, 4  ;;  %s858_s17 = scalar_lea.hbm %s920_s3, %s509_s26  ;;  %s860_s25 = int_to_ptr.vmem [resolvable:$true] %s366_s25 }
  0x2c   : > { %s348_s20 = scalar_lea.sflag [#allocation3], %s247_s22  ;;  %s614_s29 = scalar_lea.vmem %s860_s25, 64 }
  0x2d   : > { %p615_p2 = scmp.ne.s32.totalorder %s860_s25, %s614_s29  ;;  %s728_s11 = smov [#allocation2]  }
  0x2e   : > { %520 = vmatmul.mubr.msk.bf16.vlgmr.msra.gmra.mrb[0].mxu0 %vm300_vm1, %v276_v3  ;;  %s618_s23 = sshll.u32 %s728_s11, 4  ;;  %s619_s23 = int_to_ptr.vmem [resolvable:$false] %s618_s23 }
  0x2f   : > { %p616_p3 = pnand %p615_p2, %p817_p6  ;;  %s620_s27 = scalar_lea.vmem %s619_s23, 128 }
  0x30   : > { %p621_p5 = scmp.lt.s32.totalorder %s860_s25, %s619_s23  ;;  %p622_p7 = scmp.lt.s32.totalorder %s620_s27, %s614_s29 }
  0x31   : > { %p617_p4 = pneg %p616_p3 }
  0x32   : > { %p623_p9 = por %p622_p7, %p621_p5 }
  0x34   : > { %p624_p10 = pnand %p623_p9, %p617_p4 }
 0x101   : > { %v338_v5 = vpop.f32.mrb[0].mxu0 }
 0x102   : > { %v339_v6 = vadd.f32 %v502_v4, %v338_v5  ;;  %v521_v7 = vpop.f32.mrb[1].mxu0 }
 0x103   : > { %v341_v8 = vpop.f32.mrb[2].mxu0 }
 0x104   : > { %v344_v9 = vpack.c.bf16 %v339_v6, %v339_v6  ;;  %v522_v10 = vpop.f32.mrb[3].mxu0 }
 0x106   : > { %346 = vst.msk [vmem:[%s249_s24] sm:$0xf] %vm345_vm2, %v344_v9 }
 0x107   : > { %627 = shalt.err (!%p624_p10)
}
 0x108   : > { %s628_s22 = scalar_lea.hbm %s858_s17, 64  ;;  %s632_s5 = scalar_lea.hbm %s920_s3, 1536 }
 0x109   : > { %p629_p11 = scmp.ne.s32.totalorder %s858_s17, %s628_s22  ;;  %p633_p0 = scmp.lt.u32.totalorder %s858_s17, %s920_s3 }
 0x10a   : > { %p634_p1 = scmp.lt.u32.totalorder %s632_s5, %s628_s22  ;;  %p636_p3 = scmp.lt.u32.totalorder %s628_s22, %s858_s17 }
 0x10b   : > { %p630_p12 = pnand %p629_p11, %p817_p6 }
 0x10c   : > { %p635_p2 = por %p634_p1, %p633_p0 }
 0x10d   : > { %p631_p13 = pneg %p630_p12 }
 0x10e   : > { %p637_p4 = por %p636_p3, %p635_p2 }
 0x110   : > { %p638_p5 = pnand %p637_p4, %p631_p13 }
 0x112   : > { %641 = shalt.err (!%p638_p5)
}
 0x113   : > { %523 = dma.vmem_to_hbm [thread:$0]  (%p817_p6), %s860_s25, 64, %s858_s17, %s348_s20  }
 0x114 PF: > { %p529_p7 = scmp.ge.s32.totalorder %s724_s21, 2  ;;  %s378_s9 = sand.u32 1, %s688_s12  }
 0x115   : > { %s379_s26 = scalar_lea.sflag [#allocation3], %s378_s9 }
 0x116   : > { %p526_p9 = pnand %p529_p7, %p822_p8 }
 0x118   : > { %683 = dma.done.wait (!%p526_p9), %s379_s26, 64  }
 0x119   : > { %685 = vsyncadd (!%p526_p9), %s379_s26, 4294967232  ;;  %s16_s21 = sadd.s32 1, %s724_s21   ;;  %s931_s17 = sld [smem:[#allocation5_spill]] }
 0x11a   : > { %p13_p10 = scmp.ge.s32.totalorder %s16_s21, 26   ;;  %s932_s30 = sld [smem:[#allocation6_spill]] }
 0x11b   : > { %s933_s24 = sld [smem:[#allocation7_spill]]  ;;  %s934_s20 = sld [smem:[#allocation8_spill]] }
 0x11c   : > { %s935_s12 = smov %s692_s13  ;;  %s936_s13 = smov %s696_s14 }
 0x11d   : > { %s937_s14 = smov %s834_s10  ;;  %s938_s15 = smov %s712_s18 }
 0x11e   : > { %s939_s16 = smov %s716_s19  ;;  %15 = sbr.rel (!%p13_p10) target bundleno = 6 (0x6), region = 73 }
 0x120   : > { %s940_s18 = smov %s932_s30 }
 0x121   : > { %s941_s19 = smov %s933_s24 }
 0x125   :  { %384 = vsyncpa [#allocation3], 1 }
 0x126   :  { %386 = vsyncpa [#allocation3 + $0x1], 1 }

</bundles_post_ra>
